<compile_context>
chip_gen: v7x
topology: tpu7x:2x2x1
jax: 0.10.0
libtpu: 0.0.40
codegen_flags: <defaults>
</compile_context>

<pallas_src>
import jax
import jax.numpy as jnp
from jax.experimental import pallas as pl
from jax.experimental.pallas import tpu as pltpu


def _cls_pos_embed_kernel(x_ref, o_ref):
    tb, tn, d = x_ref.shape
    # Main slab: lane-aligned copy of the tokens into the first D output lanes.
    o_ref[:, :, :d] = x_ref[...]
    # CLS indicator column: 1.0 only at global token index 0, 0.0 elsewhere.
    row0 = pl.program_id(1) * tn  # global row index of this N-block's first row
    rows = row0 + jax.lax.broadcasted_iota(jnp.int32, (tb, tn, 1), 1)
    o_ref[:, :, d:] = (rows == 0).astype(o_ref.dtype)


def _largest_divisor_leq(n, cap, multiple_of=1):
    """Largest v <= cap with n % v == 0 and v % multiple_of == 0 (or None)."""
    cap = min(n, max(1, cap))
    for v in range(cap, 0, -1):
        if n % v == 0 and v % multiple_of == 0:
            return v
    return None


def _pick_tiles(B, N, D, itemsize, target_bytes=2 << 20):
    """Choose (TB, TN) so each input tile is ~target_bytes and divides evenly."""
    sublane = max(1, 32 // itemsize)  # 8 (f32) / 16 (bf16) / 32 (int8)
    row_bytes = D * itemsize
    per_batch_bytes = N * row_bytes

    if per_batch_bytes <= target_bytes:
        # Full-N tiles; batch several batch elements per grid step.
        tn = N
        cap_tb = max(1, target_bytes // max(per_batch_bytes, 1))
        if B > 1:
            # Keep >= 2 grid steps so v7x's two TensorCores both get work.
            cap_tb = min(cap_tb, (B + 1) // 2)
        tb = _largest_divisor_leq(B, cap_tb)
    else:
        # One batch element per step is already big; tile the sequence axis.
        tb = 1
        cap_tn = max(sublane, target_bytes // max(row_bytes, 1))
        tn = _largest_divisor_leq(N, cap_tn, multiple_of=sublane)
        if tn is None:
            # TODO(synk): pad N to a sublane multiple for huge, non-divisible N;
            # full-N fallback is correct but uses a larger VMEM tile.
            tn = N
    return tb, tn


def cls_pos_embedding(tokens):
    """Pallas equivalent of CLSPosEmbeding.forward: (B, N, D) -> (B, N, D+1)."""
    B, N, D = tokens.shape
    itemsize = jnp.dtype(tokens.dtype).itemsize
    tb, tn = _pick_tiles(B, N, D, itemsize)
    grid = (B // tb, N // tn)

    return pl.pallas_call(
        _cls_pos_embed_kernel,
        out_shape=jax.ShapeDtypeStruct((B, N, D + 1), tokens.dtype),
        grid=grid,
        in_specs=[pl.BlockSpec((tb, tn, D), lambda b, n: (b, n, 0))],
        out_specs=pl.BlockSpec((tb, tn, D + 1), lambda b, n: (b, n, 0)),
        compiler_params=pltpu.CompilerParams(
            dimension_semantics=("parallel", "parallel")),
        cost_estimate=pl.CostEstimate(
            flops=0,
            transcendentals=0,
            bytes_accessed=B * N * (2 * D + 1) * itemsize),
    )(tokens)


def _reference(tokens):
    # Pure-JAX mirror of the PyTorch forward, for a correctness check.
    B, N, _ = tokens.shape
    embed = jnp.concatenate(
        [jnp.ones((B, 1, 1), tokens.dtype), jnp.zeros((B, N - 1, 1), tokens.dtype)],
        axis=1,
    )
    return jnp.concatenate([tokens, embed], axis=-1)


if __name__ == "__main__":
    B, N, D = 2, 16, 32
    tokens = jax.random.normal(jax.random.PRNGKey(0), (B, N, D), jnp.float32)

    out = jax.block_until_ready(cls_pos_embedding(tokens))
    ref = _reference(tokens)

    assert out.shape == (B, N, D + 1), out.shape
    assert bool(jnp.all(jnp.isfinite(out)))
    assert bool(jnp.allclose(out, ref)), float(jnp.max(jnp.abs(out - ref)))
    print("KERNEL_OK")
</pallas_src>

<mosaic_0001>
module attributes {stable_mosaic.version = 11 : i64} {
  func.func @_cls_pos_embed_kernel(%arg0: i32, %arg1: i32, %arg2: memref<1x16x32xf32, #tpu.memory_space<vmem>>, %arg3: memref<1x16x33xf32, #tpu.memory_space<vmem>>) attributes {dimension_semantics = [#tpu.dimension_semantics<parallel>, #tpu.dimension_semantics<parallel>], iteration_bounds = array<i64: 2, 1>, scalar_prefetch = 0 : i64, scratch_operands = 0 : i64, tpu.core_type = #tpu.core_type<tc>, window_params = [{transform_indices = @transform_0, window_bounds = array<i64: 1, 16, 32>}, {transform_indices = @transform_1, window_bounds = array<i64: 1, 16, 33>}]} {
    %c0 = arith.constant 0 : index
    %c0_0 = arith.constant 0 : index
    %c0_1 = arith.constant 0 : index
    %0 = vector.load %arg2[%c0, %c0_0, %c0_1] : memref<1x16x32xf32, #tpu.memory_space<vmem>>, vector<1x16x32xf32>
    %c0_2 = arith.constant 0 : index
    %c0_3 = arith.constant 0 : index
    %c0_4 = arith.constant 0 : index
    %1 = vector.load %arg3[%c0_2, %c0_3, %c0_4] : memref<1x16x33xf32, #tpu.memory_space<vmem>>, vector<1x16x32xf32>
    tpu.vector_store %arg3[%c0_2, %c0_3, %c0_4], %0 {strides = array<i32>} : memref<1x16x33xf32, #tpu.memory_space<vmem>>, vector<1x16x32xf32>,
    %c16_i32 = arith.constant 16 : i32
    %2 = arith.muli %arg1, %c16_i32 : i32
    %3 = tpu.iota {dimensions = array<i32: 1>} : vector<1x16x1xi32>
    %4 = vector.broadcast %2 : i32 to vector<1x16x1xi32>
    %5 = arith.addi %4, %3 : vector<1x16x1xi32>
    %c0_i32 = arith.constant 0 : i32
    %6 = vector.broadcast %c0_i32 : i32 to vector<1x16x1xi32>
    %7 = arith.cmpi eq, %5, %6 : vector<1x16x1xi32>
    %8 = arith.extui %7 : vector<1x16x1xi1> to vector<1x16x1xi32>
    %9 = arith.sitofp %8 : vector<1x16x1xi32> to vector<1x16x1xf32>
    %c0_5 = arith.constant 0 : index
    %c0_6 = arith.constant 0 : index
    %c32 = arith.constant 32 : index
    %10 = vector.load %arg3[%c0_5, %c0_6, %c32] : memref<1x16x33xf32, #tpu.memory_space<vmem>>, vector<1x16x1xf32>
    tpu.vector_store %arg3[%c0_5, %c0_6, %c32], %9 {strides = array<i32>} : memref<1x16x33xf32, #tpu.memory_space<vmem>>, vector<1x16x1xf32>,
    return
  }
  func.func @transform_0(%arg0: i32, %arg1: i32) -> (i32, i32, i32) {
    %c0_i32 = arith.constant 0 : i32
    %c0_i32_0 = arith.constant 0 : i32
    return %arg0, %arg1, %c0_i32 : i32, i32, i32
  }
  func.func @transform_1(%arg0: i32, %arg1: i32) -> (i32, i32, i32) {
    %c0_i32 = arith.constant 0 : i32
    %c0_i32_0 = arith.constant 0 : i32
    return %arg0, %arg1, %c0_i32 : i32, i32, i32
  }
}

</mosaic_0001>

<bundles_post_ra>
// kernel: tpu_custom_call.1
= control target key start
LH: loop header
LB: loop body
LE: loop exit
PB: predicated region body
PF: predicated region fallthrough
CT: control target
= control target key end

     0   :  { %6 = vsyncpa [#allocation3], 0  ;;  %s670_s0 = inlined_call_operand.hbm [shape: f32[2,16,32], index: 0, kind: input, shape index: {}]   ;;  %s671_s1 = inlined_call_operand.hbm [shape: f32[2,16,33], index: 1, kind: output, shape index: {}]  }
   0x1   :  { %8 = vsyncpa [#allocation3 + $0x1], 0 }
   0x2   :  { %9 = vsyncpa [#allocation4], 0 }
   0x3   :  { %11 = vsyncpa [#allocation4 + $0x1], 0  ;;  %s495_s6 = smov 0   ;;  %s497_s7 = smov 0  }
   0x4   :  { %s499_s8 = smov 0   ;;  %s501_s9 = smov 0  }
   0x5   :  { %s503_s10 = smov 0   ;;  %s505_s11 = smov 0  }
   0x6 LB: > { %s279_s12 = sadd.s32 4294967295, %s476_s11   ;;  %s280_s13 = sadd.s32 4294967294, %s476_s11   ;;  %s476_s11 = sphi %s505_s11, %s17_s11   ;;  %s472_s10 = sphi %s503_s10, %s686_s10   ;;  %s468_s9 = sphi %s501_s9, %s685_s9   ;;  %s464_s8 = sphi %s499_s8, %s684_s8   ;;  %s460_s7 = sphi %s497_s7, %s683_s7   ;;  %s456_s6 = sphi %s495_s6, %s682_s6  }
   0x7   : > { %s29_s14 = sadd.s32 1, %s472_s10  ;;  %s38_s15 = sadd.s32 1, %s464_s8 }
   0x8   : > { %p31_p0 = scmp.ge.s32.totalorder %s29_s14, 2  ;;  %p45_p1 = scmp.ne.s32.totalorder %s464_s8, %s460_s7 }
   0x9   : > { %p46_p2 = scmp.eq.s32.totalorder %s476_s11, 0  ;;  %p51_p3 = scmp.ne.s32.totalorder %s460_s7, %s456_s6 }
   0xa   : > { %s688_s14 = smov (%p31_p0, %s29_s14), 0  ;;  %p52_p5 = scmp.eq.s32.totalorder %s279_s12, 0 }
   0xb   : > { %p536_p4 = por %p46_p2, %p45_p1  ;;  %s33_s17 = ssub.s32 %s472_s10, %s688_s14 }
   0xc   : > { %p77_p6 = scmp.eq.s32.totalorder %s279_s12, 1  ;;  %p36_p7 = scmp.eq.s32.totalorder %s33_s17, 0 }
   0xd   : > { %p542_p8 = por %p52_p5, %p51_p3  ;;  %p83_p10 = scmp.eq.s32.totalorder %s280_s13, 1 }
   0xe   : > { %p546_p9 = por %p77_p6, %p45_p1  ;;  %p309_p13 = scmp.lt.s32.totalorder %s476_s11, 2 }
   0xf   : > { %s551_s20 = scalar_select %p36_p7, %s464_s8, %s38_s15  }
  0x10   : > { %s675_s19 = scalar_select %p546_p9, 1, 0 }
  0x11   : > { %p553_p11 = por %p83_p10, %p51_p3  ;;  %s103_s22 = sand.u32 1, %s464_s8  }
  0x12   : > { %s283_s23 = sshll.u32 %s103_s22, 4  ;;  %s295_s24 = sshll.u32 %s472_s10, 8 }
  0x13   : > { %s676_s21 = scalar_select %p553_p11, 1, 0 }
  0x14   : > { %s564_s27 = scalar_lea.hbm %s670_s0, %s295_s24  ;;  %s107_s28 = scalar_lea.vmem [#allocation2], %s283_s23 }
  0x15   : > { %s116_s29 = sshll.u32 %s107_s28, 4  ;;  %p570_p0 = pnand %p309_p13, %p536_p4  ;;  %s566_s29 = int_to_ptr.vmem [resolvable:$true] %s116_s29 }
  0x16   : > { %s575_s2 = scalar_lea.sflag [#allocation3], %s103_s22  ;;  %s364_s3 = scalar_lea.hbm %s564_s27, 256 }
  0x17   : > { %p365_p2 = scmp.ne.s32.totalorder %s564_s27, %s364_s3  ;;  %p366_p3 = pneg %p570_p0 }
  0x18   : > { %s369_s12 = scalar_lea.hbm %s670_s0, 512  ;;  %p370_p4 = scmp.lt.u32.totalorder %s564_s27, %s670_s0 }
  0x19   : > { %p367_p5 = pnand %p366_p3, %p365_p2  ;;  %p371_p7 = scmp.lt.u32.totalorder %s369_s12, %s364_s3 }
  0x1a   : > { %p373_p13 = scmp.lt.u32.totalorder %s364_s3, %s564_s27 }
  0x1b   : > { %p368_p6 = pneg %p367_p5  ;;  %p372_p10 = por %p371_p7, %p370_p4 }
  0x1d   : > { %p374_p12 = por %p373_p13, %p372_p10 }
  0x1f   : > { %p375_p1 = pnand %p374_p12, %p368_p6 }
  0x21   : > { %378 = shalt.err (!%p375_p1)
}
  0x22   : > { %s379_s16 = scalar_lea.vmem %s566_s29, 256  ;;  %s478_s17 = smov [#allocation2]  }
  0x23   : > { %p380_p2 = scmp.ne.s32.totalorder %s566_s29, %s379_s16  ;;  %s384_s22 = sshll.u32 %s478_s17, 4  ;;  %s385_s22 = int_to_ptr.vmem [resolvable:$false] %s384_s22 }
  0x24   : > { %s386_s23 = scalar_lea.vmem %s385_s22, 512  ;;  %p387_p9 = scmp.lt.s32.totalorder %s566_s29, %s385_s22 }
  0x25   : > { %p382_p5 = pnand %p380_p2, %p366_p3  ;;  %p388_p4 = scmp.lt.s32.totalorder %s386_s23, %s379_s16 }
  0x27   : > { %p383_p11 = pneg %p382_p5  ;;  %p389_p7 = por %p388_p4, %p387_p9 }
  0x29   : > { %p390_p10 = pnand %p389_p7, %p383_p11 }
  0x2b   : > { %393 = shalt.err (!%p390_p10)
}
  0x2c   : > { %s479_s24 = smov 128   ;;  %s480_s25 = smov 8  }
  0x2d   : > { %304 = dma.hbm_to_vmem [thread:$0]  (!%p570_p0), %s564_s27, 256, %s566_s29, %s575_s2, %s479_s24, %s479_s24, %s480_s25  }
  0x2e   : > { %p124_p12 = scmp.lt.s32.totalorder %s476_s11, 3  ;;  %p678_p1 = scmp.ge.s32.totalorder %s476_s11, 1 }
  0x30   : > { %p125_p3 = pnand %p678_p1, %p124_p12 }
  0x31   : > { %s607_s26 = sand.u32 (!%p125_p3), 1, %s460_s7  }
  0x32   : > { %128 = sbr.rel (%p125_p3) target bundleno = 85 (0x55), region = 24  ;;  %s287_s28 = sshll.u32 (!%p125_p3), %s607_s26, 4 }
  0x33   : > { %s131_s3 = scalar_lea.sflag (!%p125_p3), [#allocation3], %s607_s26  ;;  %s134_s4 = scalar_lea.vmem (!%p125_p3), [#allocation2], %s287_s28 }
  0x39   : > { %447 = dma.done.wait (%p542_p8), %s131_s3, 256  }
  0x3a   : > { %449 = vsyncadd (%p542_p8), %s131_s3, 4294967040  ;;  %v161_v0 = vlaneseq  ;;  %s152_s27 = scalar_lea.vmem [#allocation5], %s287_s28  ;;  %s296_s30 = sshll.u32 %s468_s9, 8  ;;  %vm157_vm1 = vcmask 261120   ;;  %v481_v2 = vmov 0.0   ;;  %vm173_vm2 = vcmask 269568  }
  0x3b   : > { %s192_s29 = sshll.u32 %s152_s27, 4  ;;  %s621_s5 = scalar_lea.hbm %s671_s1, %s296_s30  ;;  %v155_v4 = vld [vmem:[%s134_s4] sm:$0xff]  ;;  %v156_v5 = vld [vmem:[%s134_s4 + $0x8] sm:$0xff]  ;;  %s616_s29 = int_to_ptr.vmem [resolvable:$true] %s192_s29 }
  0x3c   : > { %v162_v1 = vshrl.u32 %v161_v0, 7  ;;  %158 = vst.msk [vmem:[%s152_s27] sm:$0xff] %vm157_vm1, %v155_v4  ;;  %159 = vst.msk [vmem:[%s152_s27 + $0x8] sm:$0xff] %vm157_vm1, %v156_v5  ;;  %s177_s9 = scalar_lea.sflag [#allocation4], %s607_s26  ;;  %s394_s12 = scalar_lea.vmem %s616_s29, 256 }
  0x3d   : > { %175 = vst.msk [vmem:[%s152_s27 + $0x8] sm:$0xff] %vm173_vm2, %v481_v2  ;;  %p395_p8 = scmp.ne.s32.totalorder %s616_s29, %s394_s12  ;;  %p679_p9 = scmp.ne.s32.totalorder %s675_s19, 0 }
  0x3e   : > { %vm167_vm0 = vcmp.eq.s32.totalorder %v162_v1, 0  ;;  %s482_s13 = smov [#allocation5]  }
  0x3f   : > { %v289_v3 = vsel %vm167_vm0, 1.0, %v481_v2  ;;  %p396_p11 = pnand %p395_p8, %p679_p9  ;;  %s398_s15 = sshll.u32 %s482_s13, 4  ;;  %s399_s15 = int_to_ptr.vmem [resolvable:$false] %s398_s15 }
  0x40   : > { %174 = vst.msk [vmem:[%s152_s27] sm:$0xff] %vm173_vm2, %v289_v3  ;;  %s400_s16 = scalar_lea.vmem %s399_s15, 512  ;;  %p401_p6 = scmp.lt.s32.totalorder %s616_s29, %s399_s15 }
  0x41   : > { %p397_p0 = pneg %p396_p11  ;;  %p402_p13 = scmp.lt.s32.totalorder %s400_s16, %s394_s12 }
  0x43   : > { %p403_p2 = por %p402_p13, %p401_p6 }
  0x45   : > { %p404_p5 = pnand %p403_p2, %p397_p0 }
  0x47   : > { %407 = shalt.err (!%p404_p5)
}
  0x48   : > { %s408_s17 = scalar_lea.hbm %s621_s5, 256  ;;  %s412_s24 = scalar_lea.hbm %s671_s1, 512 }
  0x49   : > { %p409_p4 = scmp.ne.s32.totalorder %s621_s5, %s408_s17  ;;  %p413_p12 = scmp.lt.u32.totalorder %s621_s5, %s671_s1 }
  0x4a   : > { %p414_p1 = scmp.lt.u32.totalorder %s412_s24, %s408_s17  ;;  %p416_p8 = scmp.lt.u32.totalorder %s408_s17, %s621_s5 }
  0x4b   : > { %p410_p7 = pnand %p409_p4, %p679_p9 }
  0x4c   : > { %p415_p3 = por %p414_p1, %p413_p12 }
  0x4d   : > { %p411_p10 = pneg %p410_p7 }
  0x4e   : > { %p417_p11 = por %p416_p8, %p415_p3 }
  0x50   : > { %p418_p0 = pnand %p417_p11, %p411_p10 }
  0x52   : > { %421 = shalt.err (!%p418_p0)
}
  0x53   : > { %s483_s3 = smov 128   ;;  %s484_s4 = smov 8  }
  0x54   : > { %299 = dma.vmem_to_hbm [thread:$0]  (%p679_p9), %s616_s29, 256, %s621_s5, %s177_s9, %s483_s3, %s483_s3, %s484_s4  }
  0x55 PF: > { %s207_s27 = sand.u32 1, %s456_s6   ;;  %p680_p6 = scmp.ne.s32.totalorder %s676_s21, 0 }
  0x56   : > { %p681_p13 = scmp.ge.s32.totalorder %s476_s11, 2  ;;  %s208_s30 = scalar_lea.sflag [#allocation4], %s207_s27 }
  0x58   : > { %p306_p2 = pnand %p681_p13, %p680_p6 }
  0x5a   : > { %451 = dma.done.wait (!%p306_p2), %s208_s30, 256  }
  0x5b   : > { %453 = vsyncadd (!%p306_p2), %s208_s30, 4294967040  ;;  %s17_s11 = sadd.s32 1, %s476_s11   ;;  %s682_s6 = smov %s460_s7 }
  0x5c   : > { %p14_p5 = scmp.ge.s32.totalorder %s17_s11, 4   ;;  %s683_s7 = smov %s464_s8 }
  0x5d   : > { %s684_s8 = smov %s551_s20  ;;  %s685_s9 = smov %s472_s10 }
  0x5e   : > { %s686_s10 = smov %s688_s14  ;;  %16 = sbr.rel (!%p14_p5) target bundleno = 6 (0x6), region = 69 }
  0x65   :  { %213 = vsyncpa [#allocation3], 1 }
  0x66   :  { %215 = vsyncpa [#allocation3 + $0x1], 1 }
  0x67   :  { %216 = vsyncpa [#allocation4], 1 }
  0x68   :  { %218 = vsyncpa [#allocation4 + $0x1], 1 }

</bundles_post_ra>
